<compile_context>
chip_gen: v6e
topology: v6e:2x2x1
jax: 0.10.0
libtpu: 0.0.40
codegen_flags: <defaults>
</compile_context>

<pallas_src>
import functools

import jax
import jax.numpy as jnp
from jax.experimental import pallas as pl
from jax.experimental.pallas import tpu as pltpu


def _round_up(x, m):
    return ((x + m - 1) // m) * m


def _decoder_kernel(x_ref, w_ref, bo_ref, out_ref):
    """Fused decoder forward for one (batch tile, width tile).

    x_ref  : [TB, H]   hidden vectors (row tile)
    w_ref  : [H, TN]   packed weights: [w1 | 0.5*w2 | zero pad] column slice
    bo_ref : [2, TN]   row 0 = packed bias, row 1 = post-activation offset
    out_ref: [TB, TN]  0.5 * tanh(x @ w + b) + offset
                       (== tanh(.)/2 for point-cloud cols, sigmoid(.) for the
                        scale col, 0 for padding cols)
    """
    y = jnp.dot(x_ref[...], w_ref[...], preferred_element_type=jnp.float32)
    y = y + bo_ref[0:1, :]
    out_ref[...] = (0.5 * jnp.tanh(y) + bo_ref[1:2, :]).astype(out_ref.dtype)


def decoder_forward(hidden_vector, w1, b1, w2=None, b2=None, *,
                    num_points, scale=True):
    """Runs the fused Pallas decoder.

    hidden_vector: [B, H] float32
    w1: [H, num_points*3], b1: [num_points*3]
    w2: [H, 1],            b2: [1]            (only used when scale=True)
    Returns (point_cloud [B, num_points, 3], scaling [B, 1] or None).
    """
    B, H = hidden_vector.shape
    N3 = num_points * 3
    use_scale = scale and (w2 is not None) and (b2 is not None)

    # --- Pack both heads into one lane-dense weight block. -------------------
    # sigmoid(z) = 0.5*tanh(z/2) + 0.5  ->  pre-scale the scale head by 0.5 and
    # add a post-activation offset of 0.5 on that column.
    if use_scale:
        w = jnp.concatenate([w1, 0.5 * w2.reshape(H, 1)], axis=1)          # [H, N3+1]
        b = jnp.concatenate([b1.reshape(N3), 0.5 * b2.reshape(1)], axis=0)  # [N3+1]
        width = N3 + 1
    else:
        w = w1
        b = b1.reshape(N3)
        width = N3

    Wpad = _round_up(width, 128)
    if Wpad != width:
        w = jnp.pad(w, ((0, 0), (0, Wpad - width)))
        b = jnp.pad(b, ((0, Wpad - width),))

    # Post-activation offset: 0.5 on the scale column, 0 elsewhere.
    off = jnp.zeros((Wpad,), jnp.float32)
    if use_scale:
        off = off.at[N3].set(0.5)
    bo = jnp.stack([b.astype(jnp.float32), off], axis=0)                    # [2, Wpad]

    # --- Width tiling: keep the weight block bounded (~4 MiB) in VMEM. -------
    max_tn = max(128, ((4 * 1024 * 1024) // (max(H, 1) * 4)) // 128 * 128)
    if Wpad <= max_tn:
        TN = Wpad
    else:
        # Largest multiple-of-128 divisor of Wpad that fits the budget — no
        # extra column padding, every tile stays lane-dense.
        k = Wpad // 128
        cap = max_tn // 128
        d = 1
        for c in range(1, cap + 1):
            if k % c == 0:
                d = c
        TN = 128 * d

    # --- Batch tiling: pad to sublane multiples; grid over batch tiles. ------
    B8 = _round_up(B, 8)
    TB = B8 if B8 <= 512 else 256
    B_pad = _round_up(B, TB)
    x = hidden_vector
    if B_pad != B:
        x = jnp.pad(x, ((0, B_pad - B), (0, 0)))

    grid = (B_pad // TB, Wpad // TN)

    flops = 2 * B_pad * H * Wpad
    bytes_accessed = 4 * (B_pad * H + H * Wpad + 2 * Wpad + B_pad * Wpad)

    out = pl.pallas_call(
        functools.partial(_decoder_kernel),
        out_shape=jax.ShapeDtypeStruct((B_pad, Wpad), jnp.float32),
        grid=grid,
        in_specs=[
            pl.BlockSpec((TB, H), lambda i, j: (i, 0)),    # x: tiled over batch
            pl.BlockSpec((H, TN), lambda i, j: (0, j)),    # weights: width tiles
            pl.BlockSpec((2, TN), lambda i, j: (0, j)),    # bias + offset
        ],
        out_specs=pl.BlockSpec((TB, TN), lambda i, j: (i, j)),
        compiler_params=pltpu.CompilerParams(
            dimension_semantics=("parallel", "parallel"),
        ),
        cost_estimate=pl.CostEstimate(
            flops=flops,
            transcendentals=B_pad * Wpad,
            bytes_accessed=bytes_accessed,
        ),
    )(x, w, bo)

    # Plain-JAX glue: strip padding, give the point cloud its [B, N, 3] view.
    point_cloud = out[:B, :N3].reshape(B, num_points, 3)
    scaling = out[:B, N3:N3 + 1] if use_scale else None
    return point_cloud, scaling


if __name__ == "__main__":
    # Small shapes consistent with the module's forward.
    B = 2                # batch
    H = 32               # hidden_dimensions
    N = 64               # number_of_point_cloud_points
    SCALE = True

    key = jax.random.PRNGKey(0)
    k_x, k_w1, k_b1, k_w2, k_b2 = jax.random.split(key, 5)

    hidden_vector = jax.random.normal(k_x, (B, H), dtype=jnp.float32)

    # Deterministic synthetic parameters (PyTorch-Linear-like uniform init).
    bound1 = 1.0 / jnp.sqrt(H)
    w1 = jax.random.uniform(k_w1, (H, N * 3), jnp.float32, -bound1, bound1)
    b1 = jax.random.uniform(k_b1, (N * 3,), jnp.float32, -bound1, bound1)
    w2 = jax.random.uniform(k_w2, (H, 1), jnp.float32, -bound1, bound1)
    b2 = jax.random.uniform(k_b2, (1,), jnp.float32, -bound1, bound1)

    point_cloud, scaling = decoder_forward(
        hidden_vector, w1, b1, w2, b2, num_points=N, scale=SCALE
    )
    jax.block_until_ready(point_cloud)
    if scaling is not None:
        jax.block_until_ready(scaling)

    # Lightweight sanity checks against a pure-JAX reference.
    ref_pc = (jnp.tanh(hidden_vector @ w1 + b1) / 2.0).reshape(B, N, 3)
    ref_sc = jax.nn.sigmoid(hidden_vector @ w2 + b2)
    assert point_cloud.shape == (B, N, 3)
    assert scaling.shape == (B, 1)
    assert jnp.allclose(point_cloud, ref_pc, atol=1e-5)
    assert jnp.allclose(scaling, ref_sc, atol=1e-5)

    # Also exercise the scale=False path.
    pc_only, none_scale = decoder_forward(
        hidden_vector, w1, b1, num_points=N, scale=False
    )
    jax.block_until_ready(pc_only)
    assert none_scale is None
    assert jnp.allclose(pc_only, ref_pc, atol=1e-5)

    print("KERNEL_OK")
</pallas_src>

<mosaic_0001>
module attributes {stable_mosaic.version = 11 : i64} {
  func.func @_decoder_kernel(%arg0: i32, %arg1: i32, %arg2: memref<8x32xf32, #tpu.memory_space<vmem>>, %arg3: memref<32x256xf32, #tpu.memory_space<vmem>>, %arg4: memref<2x256xf32, #tpu.memory_space<vmem>>, %arg5: memref<8x256xf32, #tpu.memory_space<vmem>>) attributes {dimension_semantics = [#tpu.dimension_semantics<parallel>, #tpu.dimension_semantics<parallel>], iteration_bounds = array<i64: 1, 1>, scalar_prefetch = 0 : i64, scratch_operands = 0 : i64, tpu.core_type = #tpu.core_type<tc>, window_params = [{transform_indices = @transform_0, window_bounds = array<i64: 8, 32>}, {transform_indices = @transform_1, window_bounds = array<i64: 32, 256>}, {transform_indices = @transform_2, window_bounds = array<i64: 2, 256>}, {transform_indices = @transform_3, window_bounds = array<i64: 8, 256>}]} {
    %c0 = arith.constant 0 : index
    %c0_0 = arith.constant 0 : index
    %0 = vector.load %arg2[%c0, %c0_0] : memref<8x32xf32, #tpu.memory_space<vmem>>, vector<8x32xf32>
    %c0_1 = arith.constant 0 : index
    %c0_2 = arith.constant 0 : index
    %1 = vector.load %arg3[%c0_1, %c0_2] : memref<32x256xf32, #tpu.memory_space<vmem>>, vector<32x256xf32>
    %cst = arith.constant dense<0.000000e+00> : vector<8x256xf32>
    %2 = tpu.matmul %0, %1, %cst {dimension_numbers = #tpu.dot_dimension_numbers<[1], [0], [0], [1], [0, 0, 1, 1], [], []>} : vector<8x32xf32>, vector<32x256xf32>, vector<8x256xf32> -> vector<8x256xf32>
    %c0_3 = arith.constant 0 : index
    %c0_4 = arith.constant 0 : index
    %3 = vector.load %arg4[%c0_3, %c0_4] : memref<2x256xf32, #tpu.memory_space<vmem>>, vector<1x256xf32>
    %4 = vector.broadcast %3 : vector<1x256xf32> to vector<8x256xf32>
    %5 = arith.addf %2, %4 : vector<8x256xf32>
    %6 = math.tanh %5 : vector<8x256xf32>
    %cst_5 = arith.constant 5.000000e-01 : f32
    %7 = vector.broadcast %cst_5 : f32 to vector<8x256xf32>
    %8 = arith.mulf %7, %6 : vector<8x256xf32>
    %c1 = arith.constant 1 : index
    %c0_6 = arith.constant 0 : index
    %9 = vector.load %arg4[%c1, %c0_6] : memref<2x256xf32, #tpu.memory_space<vmem>>, vector<1x256xf32>
    %10 = vector.broadcast %9 : vector<1x256xf32> to vector<8x256xf32>
    %11 = arith.addf %8, %10 : vector<8x256xf32>
    %c0_7 = arith.constant 0 : index
    %c0_8 = arith.constant 0 : index
    %12 = vector.load %arg5[%c0_7, %c0_8] : memref<8x256xf32, #tpu.memory_space<vmem>>, vector<8x256xf32>
    tpu.vector_store %arg5[%c0_7, %c0_8], %11 {strides = array<i32>} : memref<8x256xf32, #tpu.memory_space<vmem>>, vector<8x256xf32>,
    return
  }
  func.func @transform_0(%arg0: i32, %arg1: i32) -> (i32, i32) {
    %c0_i32 = arith.constant 0 : i32
    %c0_i32_0 = arith.constant 0 : i32
    return %arg0, %c0_i32 : i32, i32
  }
  func.func @transform_1(%arg0: i32, %arg1: i32) -> (i32, i32) {
    %c0_i32 = arith.constant 0 : i32
    %c0_i32_0 = arith.constant 0 : i32
    return %c0_i32, %arg1 : i32, i32
  }
  func.func @transform_2(%arg0: i32, %arg1: i32) -> (i32, i32) {
    %c0_i32 = arith.constant 0 : i32
    %c0_i32_0 = arith.constant 0 : i32
    return %c0_i32, %arg1 : i32, i32
  }
  func.func @transform_3(%arg0: i32, %arg1: i32) -> (i32, i32) {
    %c0_i32 = arith.constant 0 : i32
    return %arg0, %arg1 : i32, i32
  }
}

</mosaic_0001>

<bundles_post_ra>
// kernel: tpu_custom_call.1
= control target key start
LH: loop header
LB: loop body
LE: loop exit
PB: predicated region body
PF: predicated region fallthrough
CT: control target
= control target key end

     0   :  { %8 = vsyncpa [#allocation3], 0  ;;  %s322_s0 = inlined_call_operand.hbm [shape: f32[8,32], index: 0, kind: input, shape index: {}]   ;;  %s323_s1 = inlined_call_operand.hbm [shape: f32[32,256], index: 1, kind: input, shape index: {}]   ;;  %s324_s2 = inlined_call_operand.hbm [shape: f32[2,256], index: 2, kind: input, shape index: {}]   ;;  %s325_s3 = inlined_call_operand.hbm [shape: f32[8,256], index: 3, kind: output, shape index: {}]  }
   0x1   :  { %9 = vsyncpa [#allocation6], 0 }
   0x2   :  { %10 = vsyncpa [#allocation4], 0  ;;  %s283_s12 = smov [#allocation5]  }
   0x3   :  { %s26_s13 = sshll.u32 %s283_s12, 4  ;;  %s27_s13 = int_to_ptr.vmem [resolvable:$true] %s26_s13 }
   0x4   :  { %s205_s14 = scalar_lea.vmem %s27_s13, 1024  ;;  %p210_p1 = scmp.lt.s32.totalorder %s27_s13, %s27_s13 }
   0x5   :  { %p206_p0 = scmp.ne.s32.totalorder %s27_s13, %s205_s14  ;;  %p211_p2 = scmp.lt.s32.totalorder %s205_s14, %s205_s14 }
   0x7   :  { %p212_p3 = por %p211_p2, %p210_p1 }
   0x9   :  { %p213_p4 = pnand %p212_p3, %p206_p0 }
   0xb   :  { %216 = shalt.err (!%p213_p4)
}
   0xc   :  { %s284_s15 = smov 256   ;;  %s285_s16 = smov 16  }
   0xd   :  { %32 = dma.hbm_to_vmem [thread:$0]  %s323_s1, 1024, %s27_s13, [#allocation6], %s284_s15, %s284_s15, %s285_s16  }
   0xe   :  { %s286_s19 = smov [#allocation2]   ;;  %s287_s21 = smov [#allocation7]  }
   0xf   :  { %s17_s20 = sshll.u32 %s286_s19, 4  ;;  %s39_s22 = sshll.u32 %s287_s21, 4  ;;  %s18_s20 = int_to_ptr.vmem [resolvable:$true] %s17_s20  ;;  %s40_s22 = int_to_ptr.vmem [resolvable:$true] %s39_s22 }
  0x10   :  { %s225_s23 = scalar_lea.vmem %s18_s20, 128  ;;  %p230_p6 = scmp.lt.s32.totalorder %s18_s20, %s18_s20 }
  0x11   :  { %p226_p5 = scmp.ne.s32.totalorder %s18_s20, %s225_s23  ;;  %p231_p7 = scmp.lt.s32.totalorder %s225_s23, %s225_s23 }
  0x13   :  { %p232_p8 = por %p231_p7, %p230_p6 }
  0x15   :  { %p233_p9 = pnand %p232_p8, %p226_p5 }
  0x17   :  { %236 = shalt.err (!%p233_p9)
}
  0x18   :  { %20 = dma.hbm_to_vmem [thread:$0]  %s322_s0, 128, %s18_s20, [#allocation3]  }
  0x19   :  { %s245_s26 = scalar_lea.vmem %s40_s22, 64  ;;  %p250_p11 = scmp.lt.s32.totalorder %s40_s22, %s40_s22 }
  0x1a   :  { %p246_p10 = scmp.ne.s32.totalorder %s40_s22, %s245_s26  ;;  %p251_p12 = scmp.lt.s32.totalorder %s245_s26, %s245_s26 }
  0x1c   :  { %p252_p13 = por %p251_p12, %p250_p11 }
  0x1e   :  { %p253_p0 = pnand %p252_p13, %p246_p10 }
  0x20   :  { %256 = shalt.err (!%p253_p0)
}
  0x21   :  { %42 = dma.hbm_to_vmem [thread:$0]  %s324_s2, 64, %s40_s22, [#allocation6]  }
  0x22   :  { %277 = dma.done.wait [#allocation3], 128  }
  0x23   :  { %278 = vsyncadd [#allocation3], 4294967168 }
  0x24   :  { %279 = dma.done.wait [#allocation6], 1088  }
  0x25   :  { %280 = vsyncadd [#allocation6], 4294966208  ;;  %v288_v0 = vmov 0.0   ;;  %v60_v1 = vld [vmem:[#allocation5 + $0x38] sm:$0xff]  ;;  %v59_v2 = vld [vmem:[#allocation5 + $0x30] sm:$0xff]  ;;  %vm73_vm0 = vcmask 261120   ;;  %v63_v10 = vlaneseq }
  0x26   :  { %141 = vmatprep.mubr.f32.mxu0 %v288_v0  ;;  %v58_v3 = vld [vmem:[#allocation5 + $0x28] sm:$0xff]  ;;  %101 = vmatprep.subr.mxu0 %v60_v1  ;;  %v57_v4 = vld [vmem:[#allocation5 + $0x20] sm:$0xff]  ;;  %v56_v5 = vld [vmem:[#allocation5 + $0x18] sm:$0xff]  ;;  %s289_s0 = smov [#allocation8]  }
  0x27   :  { %102 = vmatpush1.msra.mxu0 %v59_v2  ;;  %v55_v6 = vld [vmem:[#allocation5 + $0x10] sm:$0xff]  ;;  %v54_v7 = vld [vmem:[#allocation5 + $0x8] sm:$0xff]  ;;  %v53_v8 = vld [vmem:[#allocation5] sm:$0xff]  ;;  %v64_v11 = vshrl.u32 %v63_v10, 7  ;;  %s175_s2 = sshll.u32 %s289_s0, 4  ;;  %s176_s2 = int_to_ptr.vmem [resolvable:$true] %s175_s2 }
  0x28   :  { %103 = vmatprep.subr.mxu0 %v58_v3  ;;  %v52_v9 = vld [vmem:[#allocation2] sm:$0xff]  ;;  %v61_v13 = vld [vmem:[#allocation7] ss:$2 sm:$0x3]  ;;  %s257_s28 = scalar_lea.vmem %s176_s2, 256  ;;  %p262_p2 = scmp.lt.s32.totalorder %s176_s2, %s176_s2 }
  0x29   :  { %104 = vmatpush1.msra.mxu0 %v57_v4  ;;  %v65_v12 = vsub.s32 0, %v64_v11  ;;  %v69_v14 = vsub.s32 1, %v64_v11  ;;  %v153_v21 = vld [vmem:[#allocation7 + $0x1] ss:$2 sm:$0x3]  ;;  %p258_p1 = scmp.ne.s32.totalorder %s176_s2, %s257_s28  ;;  %p263_p3 = scmp.lt.s32.totalorder %s257_s28, %s257_s28 }
  0x2a   :  { %105 = vmatprep.subr.mxu0 %v56_v5 }
  0x2b   :  { %106 = vmatpush1.msra.mxu0 %v55_v6  ;;  %v66_v15 = vrot.slane %v61_v13, %v65_v12  ;;  %v70_v16 = vrot.slane %v61_v13, %v69_v14  ;;  %v158_v22 = vrot.slane %v153_v21, %v65_v12  ;;  %v162_v25 = vrot.slane %v153_v21, %v69_v14  ;;  %p264_p4 = por %p263_p3, %p262_p2 }
  0x2c   :  { %107 = vmatprep.subr.mxu0 %v54_v7 }
  0x2d   :  { %108 = vmatpush1.msra.mxu0 %v53_v8  ;;  %p265_p5 = pnand %p264_p4, %p258_p1 }
  0x2e   :  { %185 = vmatmul.mubr.msk.f32.vlgmr.msra.gmra.mxu0 %vm73_vm0, %v52_v9 }
  0xee   :  { %v143_v17 = vpop.f32.mrf.mxu0 }
  0xef   :  { %v144_v18 = vadd.f32 %v143_v17, %v66_v15 }
  0xf0   :  { %v145_v19 = vpop.f32.mrf.mxu0 }
  0xf1   :  { %193 = vtanh.f32 %v144_v18  ;;  %v146_v20 = vadd.f32 %v145_v19, %v70_v16 }
  0xf3   :  { %195 = vtanh.f32 %v146_v20 }
  0xfe   :  { %v194_v23 = vpop.eup %193 }
  0xff   :  { %v150_v24 = vmul.f32 0.5, %v194_v23 }
 0x100   :  { %v196_v26 = vpop.eup %195 }
 0x101   :  { %v151_v27 = vmul.f32 0.5, %v196_v26  ;;  %v165_v28 = vadd.f32 %v158_v22, %v150_v24 }
 0x103   :  { %v166_v29 = vadd.f32 %v162_v25, %v151_v27  ;;  %167 = vst [vmem:[#allocation8] sm:$0xff] %v165_v28 }
 0x105   :  { %168 = vst [vmem:[#allocation8 + $0x8] sm:$0xff] %v166_v29 }
 0x106   :  { %268 = shalt.err (!%p265_p5)
}
 0x107   :  { %178 = dma.vmem_to_hbm [thread:$0]  %s176_s2, 256, %s325_s3, [#allocation4]  }
 0x108   :  { %281 = dma.done.wait [#allocation4], 256  }
 0x109   :  { %282 = vsyncadd [#allocation4], 4294967040 }
 0x10a   :  { %182 = vsyncpa [#allocation3], 1 }
 0x10b   :  { %183 = vsyncpa [#allocation6], 1 }
 0x10c   :  { %184 = vsyncpa [#allocation4], 1 }

</bundles_post_ra>
